<compile_context>
chip_gen: v5e
topology: v5e:2x2
jax: 0.10.0
libtpu: 0.0.40
codegen_flags: <defaults>
</compile_context>

<pallas_src>
import jax
import jax.numpy as jnp
from jax.experimental import pallas as pl
from jax.experimental.pallas import tpu as pltpu


# ---------------------------------------------------------------------------
# Materialize path A (default): direct HBM -> HBM DMA, no VMEM round trip.
# ---------------------------------------------------------------------------
def _hbm_dma_copy_kernel(x_hbm_ref, o_hbm_ref, sem):
    cp = pltpu.make_async_copy(x_hbm_ref, o_hbm_ref, sem)
    cp.start()
    cp.wait()


def _dma_copy(x):
    return pl.pallas_call(
        _hbm_dma_copy_kernel,
        out_shape=jax.ShapeDtypeStruct(x.shape, x.dtype),
        in_specs=[pl.BlockSpec(memory_space=pl.ANY)],
        out_specs=pl.BlockSpec(memory_space=pl.ANY),
        scratch_shapes=[pltpu.SemaphoreType.DMA(())],
        cost_estimate=pl.CostEstimate(
            flops=0,
            transcendentals=0,
            bytes_accessed=2 * x.size * x.dtype.itemsize,
        ),
        compiler_params=pltpu.CompilerParams(has_side_effects=True),
    )(x)


# ---------------------------------------------------------------------------
# Materialize path B: pipelined lane-dense VMEM copy (byte-targeted blocks,
# masked partial last block, no padding, no output slice).
# ---------------------------------------------------------------------------
def _copy_block_kernel(x_ref, o_ref):
    o_ref[...] = x_ref[...]


_LANE_CHOICES = (1024, 512, 256, 128)  # widest lane-dense view that divides x


def _tiled_copy(x, block_bytes):
    total = x.size
    dtype = x.dtype
    itemsize = jnp.dtype(dtype).itemsize

    lanes = next((l for l in _LANE_CHOICES if total % l == 0), None)
    if lanes is None:
        # Rare case total % 128 != 0: padding + tail-slice would each add a
        # full extra HBM pass, so fall back to the direct HBM->HBM DMA.
        return _dma_copy(x)

    rows = total // lanes

    # Sublane rounding follows dtype packing: 8 (4-byte), 16 (bf16), 32 (int8).
    packing = max(1, 4 // itemsize)
    sublane = 8 * packing

    # Byte-targeted block: ~block_bytes per block (>= ~1 MiB roofline sweet
    # spot).  Input+output double-buffered = 4 x block_bytes live, which at the
    # 2 MiB default stays well under v5e's 16 MiB / v7x's 32 MiB scoped VMEM.
    br = max(sublane, (block_bytes // (lanes * itemsize)) // sublane * sublane)
    if br >= rows:
        br = rows  # single full-extent block (legal even if rows % 8 != 0)

    grid = (pl.cdiv(rows, br),)  # partial last block is masked by Pallas

    x2d = x.reshape(rows, lanes)  # contiguous reshape: no extra HBM pass
    y2d = pl.pallas_call(
        _copy_block_kernel,
        out_shape=jax.ShapeDtypeStruct((rows, lanes), dtype),
        grid=grid,
        in_specs=[pl.BlockSpec((br, lanes), lambda i: (i, 0))],
        out_specs=pl.BlockSpec((br, lanes), lambda i: (i, 0)),
        compiler_params=pltpu.CompilerParams(
            # v7x: shard the copy across both TensorCores; no-op on v5e/v6e.
            dimension_semantics=("parallel",),
        ),
        cost_estimate=pl.CostEstimate(
            flops=0,
            transcendentals=0,
            bytes_accessed=2 * total * itemsize,
        ),
    )(x2d)
    return y2d.reshape(x.shape)


# ---------------------------------------------------------------------------
# Public wrapper: IdentityContext.forward
# ---------------------------------------------------------------------------
def identity_context(x, context=None, *, materialize=False, method="dma",
                     block_bytes=2 * 1024 * 1024):
    """Pallas implementation of IdentityContext.forward (returns x, ignores context)."""
    del context  # the reference module ignores it

    if not materialize:
        # Roofline-optimal identity: no pallas_call, no HBM traffic.
        return x

    if x.size == 0:
        # Guard empty arrays (nothing to copy; avoids zero-sized grids).
        return x

    if method == "dma":
        return _dma_copy(x)
    elif method == "tiled":
        return _tiled_copy(x, block_bytes)
    else:
        raise ValueError(f"unknown materialize method: {method!r}")


if __name__ == "__main__":
    key = jax.random.PRNGKey(0)
    kx, kc, k2 = jax.random.split(key, 3)

    # Small audio-style shapes: (batch=2, channels=4, time=256); context ignored.
    x = jax.random.normal(kx, (2, 4, 256), dtype=jnp.float32)
    context = jax.random.normal(kc, (2, 32), dtype=jnp.float32)

    # Fast path: identity returns x with no kernel / no HBM traffic.
    y_fast = identity_context(x, context)
    jax.block_until_ready(y_fast)
    assert y_fast.shape == x.shape and y_fast.dtype == x.dtype
    assert bool(jnp.all(y_fast == x))

    # Materialized path (default): single HBM->HBM DMA copy.
    y_dma = identity_context(x, context, materialize=True)
    jax.block_until_ready(y_dma)
    assert y_dma.shape == x.shape and y_dma.dtype == x.dtype
    assert bool(jnp.all(y_dma == x))

    # Materialized path (tiled): exercise the masked partial last block with a
    # deliberately tiny block budget (39 rows of 128 lanes, 8-row blocks).
    x2 = jax.random.normal(k2, (13, 384), dtype=jnp.float32)
    y_tiled = identity_context(x2, context, materialize=True,
                               method="tiled", block_bytes=4096)
    jax.block_until_ready(y_tiled)
    assert y_tiled.shape == x2.shape and y_tiled.dtype == x2.dtype
    assert bool(jnp.all(y_tiled == x2))

    # Tiled path on the main input at the default 2 MiB block budget
    # (collapses to a single full-extent block).
    y_tiled2 = identity_context(x, context, materialize=True, method="tiled")
    jax.block_until_ready(y_tiled2)
    assert y_tiled2.shape == x.shape and y_tiled2.dtype == x.dtype
    assert bool(jnp.all(y_tiled2 == x))

    print("KERNEL_OK")
</pallas_src>

<mosaic_0001>
module attributes {stable_mosaic.version = 11 : i64} {
  func.func @_hbm_dma_copy_kernel(%arg0: memref<2x4x256xf32, #tpu.memory_space<any>>, %arg1: memref<2x4x256xf32, #tpu.memory_space<any>>, %arg2: memref<!tpu.dma_semaphore, #tpu.memory_space<semaphore_mem>>) attributes {dimension_semantics = [], scalar_prefetch = 0 : i64, scratch_operands = 1 : i64, tpu.core_type = #tpu.core_type<tc>} {
    tpu.enqueue_dma source(%arg0 : memref<2x4x256xf32, #tpu.memory_space<any>>) target(%arg1 : memref<2x4x256xf32, #tpu.memory_space<any>>) target_semaphore(%arg2 : memref<!tpu.dma_semaphore, #tpu.memory_space<semaphore_mem>>)
    tpu.wait_dma2 semaphore(%arg2 : memref<!tpu.dma_semaphore, #tpu.memory_space<semaphore_mem>>) src(%arg0 : memref<2x4x256xf32, #tpu.memory_space<any>>) dst(%arg1 : memref<2x4x256xf32, #tpu.memory_space<any>>)
    return
  }
}

</mosaic_0001>

<bundles_post_ra>
// kernel: tpu_custom_call.1
= control target key start
LH: loop header
LB: loop body
LE: loop exit
PB: predicated region body
PF: predicated region fallthrough
CT: control target
= control target key end

     0   :  { %s34_s12 = smov [#allocation2]   ;;  %s35_s13 = smov [#allocation3]   ;;  %s53_s0 = inlined_call_operand.hbm [shape: f32[2,4,256], index: 0, kind: input, shape index: {}]   ;;  %s54_s1 = inlined_call_operand.hbm [shape: f32[2,4,256], index: 1, kind: output, shape index: {}]  }
   0x1   :  { %s10_s8 = sshll.u32 %s53_s0, 4  ;;  %s12_s11 = sshll.u32 %s54_s1, 4  ;;  %s11_s8 = int_to_ptr.hbm [resolvable:$true] %s10_s8  ;;  %s13_s11 = int_to_ptr.hbm [resolvable:$true] %s12_s11 }
   0x2   :  { %s36_s14 = smov 0  }
   0x3   :  { %16 = dma.general %s11_s8, 256, %s13_s11, %s34_s12, %s35_s13, [#allocation4], %s36_s14, 0  }
   0x4   :  { %32 = dma.done.wait [#allocation2], 256 }
   0x5   :  { %33 = vsyncadd [#allocation2], 4294967040 }
   0x6   :  { %22 = vsyncmov [#allocation2] }
   0x9   :  { %s23_s15 = vpop.sfrf %22 }
   0xa   :  { %p28_p0 = scmp.ne.s32.totalorder %s23_s15, 0 }
   0xc   :  { %27 = shalt.err (%p28_p0)  }

</bundles_post_ra>
